<compile_context>
chip_gen: v6e
topology: v6e:2x2x1
jax: 0.10.0
libtpu: 0.0.40
codegen_flags: <defaults>
</compile_context>

<pallas_src>
import jax
import jax.numpy as jnp
from jax import lax
from jax.experimental import pallas as pl
from jax.experimental.pallas import tpu as pltpu

# ---- model dimensions (small, consistent with the module's __init__) ----
B = 8            # batch_size
I = 32           # input_size (one-hot width)
H = 32           # hidden_size
L = 2            # num_layers (kernel written for exactly 2 stacked GRU layers)
C = 16           # context_size
O = 32           # output_size


def latent_gru_kernel(
    idx_ref,        # (B, 1) int32   item indices for this timestep
    dist_ref,       # (B, 1) f32     distance -> loc_input for this timestep
    h_init_ref,     # (L, B, H) f32  initial hidden state (read at t == 0 only)
    wf0_ref, bf0_ref, whn0_ref, bhn0_ref,   # GRU layer 0 (fused)
    wf1_ref, bf1_ref, whn1_ref, bhn1_ref,   # GRU layer 1 (fused)
    wc_ref, bc_ref,                          # context_layer: (1, C), (1, C)
    wo_ref, bo_ref,                          # h2o: (H+C, O), (1, O)
    logit_ref,      # out (B, O)             per-step logit
    h_out_ref,      # out (L, B, H)          final hidden state (written at last step)
    out_ref,        # out (B, H + C)         per-step concat output
    h_carry,        # scratch (L, B, H) f32  hidden carry, resident across grid steps
):
    t = pl.program_id(0)

    @pl.when(t == 0)
    def _():
        h_carry[...] = h_init_ref[...]

    # one-hot encode the item indices (scatter_ equivalent)
    idx = idx_ref[...]                                             # (B, 1) int32
    iota = lax.broadcasted_iota(jnp.int32, (B, I), 1)              # (B, I)
    x = (idx == iota).astype(jnp.float32)                          # (B, I)

    h0 = h_carry[0]
    h1 = h_carry[1]

    def cell(xh, h, wf, bf, whn, bhn):
        # wf = [[w_ih]; [w_hh_r, w_hh_z, 0]]  (in+H, 3H), bf = b_ih + [b_hh_r, b_hh_z, 0]
        g = jnp.dot(xh, wf, preferred_element_type=jnp.float32) + bf       # (B, 3H)
        ghn = jnp.dot(h, whn, preferred_element_type=jnp.float32) + bhn    # (B, H)
        r = jax.nn.sigmoid(g[:, 0:H])
        z = jax.nn.sigmoid(g[:, H:2 * H])
        n = jnp.tanh(g[:, 2 * H:3 * H] + r * ghn)
        return (1.0 - z) * n + z * h

    # GRU, seq_len handled by the grid; two stacked layers (eval mode, no dropout)
    h0_new = cell(jnp.concatenate([x, h0], axis=1), h0,
                  wf0_ref[...], bf0_ref[...], whn0_ref[...], bhn0_ref[...])
    h1_new = cell(jnp.concatenate([h0_new, h1], axis=1), h1,
                  wf1_ref[...], bf1_ref[...], whn1_ref[...], bhn1_ref[...])

    h_carry[0] = h0_new
    h_carry[1] = h1_new

    @pl.when(t == pl.num_programs(0) - 1)
    def _():
        h_out_ref[0] = h0_new
        h_out_ref[1] = h1_new

    # context branch: loc_embedding = relu(Linear(distance)); K=1 -> pure VPU broadcast
    loc_emb = jnp.maximum(dist_ref[...] * wc_ref[...] + bc_ref[...], 0.0)  # (B, C)

    # output = cat((gru_out, loc_embedding), dim=1); build in registers, store once,
    # and feed the register value (not a reload of out_ref) to the final matmul.
    cat = jnp.concatenate([h1_new, loc_emb], axis=1)                       # (B, H+C)
    out_ref[...] = cat
    logit_ref[...] = jnp.tanh(
        jnp.dot(cat, wo_ref[...], preferred_element_type=jnp.float32) + bo_ref[...])


def _fuse_params(p):
    """Pre-fuse GRU weights in the wrapper (done once, outside the kernel)."""
    zH = jnp.zeros((H, H), jnp.float32)
    z1H = jnp.zeros((1, H), jnp.float32)

    def fuse(w_ih, w_hh, b_ih, b_hh):
        # fused [x, h] weight: r/z columns get w_hh, n columns of the hh-part are zeroed
        wf = jnp.concatenate(
            [w_ih, jnp.concatenate([w_hh[:, :2 * H], zH], axis=1)], axis=0)
        bf = b_ih + jnp.concatenate([b_hh[:, :2 * H], z1H], axis=1)
        return wf, bf, w_hh[:, 2 * H:], b_hh[:, 2 * H:]

    wf0, bf0, whn0, bhn0 = fuse(p["w_ih0"], p["w_hh0"], p["b_ih0"], p["b_hh0"])
    wf1, bf1, whn1, bhn1 = fuse(p["w_ih1"], p["w_hh1"], p["b_ih1"], p["b_hh1"])
    return dict(wf0=wf0, bf0=bf0, whn0=whn0, bhn0=bhn0,
                wf1=wf1, bf1=bf1, whn1=whn1, bhn1=bhn1)


def latent_gru_sequence(idx_seq, dist_seq, hidden0, params):
    """Run T timesteps in one pallas_call (weights stay resident in VMEM across steps).

    idx_seq:  (T, B) int32, dist_seq: (T, B) f32, hidden0: (L, B, H) f32.
    Returns (logits (T,B,O), final_hidden (L,B,H), outputs (T,B,H+C))."""
    T = idx_seq.shape[0]
    fp = _fuse_params(params)
    idx3 = idx_seq.reshape(T, B, 1).astype(jnp.int32)
    dist3 = dist_seq.reshape(T, B, 1).astype(jnp.float32)

    def resident(a):                       # whole array, loaded once, stays in VMEM
        return pl.BlockSpec(a.shape, lambda t, _n=a.ndim: (0,) * _n)

    def per_step(last):                    # one (B, last) slab per timestep
        return pl.BlockSpec((None, B, last), lambda t: (t, 0, 0))

    weight_args = (fp["wf0"], fp["bf0"], fp["whn0"], fp["bhn0"],
                   fp["wf1"], fp["bf1"], fp["whn1"], fp["bhn1"],
                   params["wc"], params["bc"], params["wo"], params["bo"])

    in_specs = ([per_step(1), per_step(1), resident(hidden0)]
                + [resident(w) for w in weight_args])
    out_specs = (per_step(O),
                 pl.BlockSpec((L, B, H), lambda t: (0, 0, 0)),
                 per_step(H + C))
    out_shape = (jax.ShapeDtypeStruct((T, B, O), jnp.float32),
                 jax.ShapeDtypeStruct((L, B, H), jnp.float32),
                 jax.ShapeDtypeStruct((T, B, H + C), jnp.float32))

    return pl.pallas_call(
        latent_gru_kernel,
        out_shape=out_shape,
        grid=(T,),
        in_specs=in_specs,
        out_specs=out_specs,
        scratch_shapes=[pltpu.VMEM((L, B, H), jnp.float32)],
        compiler_params=pltpu.CompilerParams(
            dimension_semantics=("arbitrary",)),      # sequential carry over time
    )(idx3, dist3, hidden0, *weight_args)


def latent_gru_forward(batch_input, distance, hidden_state, params):
    """Single-step API matching the PyTorch module's forward (T = 1)."""
    logits, h, outs = latent_gru_sequence(
        batch_input.reshape(1, B), distance.reshape(1, B), hidden_state, params)
    return logits[0], h, outs[0]


def _init_params(key):
    """Deterministic init mirroring PyTorch's uniform(-1/sqrt(fan_in)) init.
    Weights are stored pre-transposed as (in_features, out_features)."""
    ks = jax.random.split(key, 12)
    u = lambda k, shape, bound: jax.random.uniform(
        k, shape, jnp.float32, minval=-bound, maxval=bound)
    bh = 1.0 / jnp.sqrt(H)
    bc_ = 1.0                          # context_layer fan_in = loc_input_size = 1
    bo = 1.0 / jnp.sqrt(H + C)         # h2o fan_in = hidden + context
    return {
        "w_ih0": u(ks[0], (I, 3 * H), bh), "w_hh0": u(ks[1], (H, 3 * H), bh),
        "b_ih0": u(ks[2], (1, 3 * H), bh), "b_hh0": u(ks[3], (1, 3 * H), bh),
        "w_ih1": u(ks[4], (H, 3 * H), bh), "w_hh1": u(ks[5], (H, 3 * H), bh),
        "b_ih1": u(ks[6], (1, 3 * H), bh), "b_hh1": u(ks[7], (1, 3 * H), bh),
        "wc": u(ks[8], (1, C), bc_), "bc": u(ks[9], (1, C), bc_),
        "wo": u(ks[10], (H + C, O), bo), "bo": u(ks[11], (1, O), bo),
    }


def _reference_step(idx, dist, hidden, p):
    """Pure-JAX reference of one module forward step (unfused weights)."""
    x = jax.nn.one_hot(idx, I, dtype=jnp.float32)
    d = dist.reshape(B, 1).astype(jnp.float32)

    def cell(x, h, w_ih, w_hh, b_ih, b_hh):
        gi = x @ w_ih + b_ih
        gh = h @ w_hh + b_hh
        r = jax.nn.sigmoid(gi[:, :H] + gh[:, :H])
        z = jax.nn.sigmoid(gi[:, H:2 * H] + gh[:, H:2 * H])
        n = jnp.tanh(gi[:, 2 * H:] + r * gh[:, 2 * H:])
        return (1 - z) * n + z * h

    h0 = cell(x, hidden[0], p["w_ih0"], p["w_hh0"], p["b_ih0"], p["b_hh0"])
    h1 = cell(h0, hidden[1], p["w_ih1"], p["w_hh1"], p["b_ih1"], p["b_hh1"])
    loc = jnp.maximum(d @ p["wc"] + p["bc"], 0.0)
    out = jnp.concatenate([h1, loc], axis=1)
    logit = jnp.tanh(out @ p["wo"] + p["bo"])
    return logit, jnp.stack([h0, h1]), out


if __name__ == "__main__":
    key = jax.random.PRNGKey(0)
    k_p, k_idx, k_dist, k_h = jax.random.split(key, 4)

    params = _init_params(k_p)
    T = 8
    idx_seq = jax.random.randint(k_idx, (T, B), 0, I, dtype=jnp.int32)
    dist_seq = jax.random.uniform(k_dist, (T, B), jnp.float32)
    hidden0 = jax.random.normal(k_h, (L, B, H), jnp.float32) * 0.1

    # kernel: whole T-step sequence in one pallas_call
    logits, h_final, outputs = jax.block_until_ready(
        latent_gru_sequence(idx_seq, dist_seq, hidden0, params))

    # reference: loop the per-step module forward
    h = hidden0
    ref_logits, ref_outs = [], []
    for t in range(T):
        lg, h, ot = _reference_step(idx_seq[t], dist_seq[t], h, params)
        ref_logits.append(lg)
        ref_outs.append(ot)
    ref_logits = jnp.stack(ref_logits)
    ref_outs = jnp.stack(ref_outs)

    ok = (jnp.allclose(logits, ref_logits, atol=1e-5)
          and jnp.allclose(h_final, h, atol=1e-5)
          and jnp.allclose(outputs, ref_outs, atol=1e-5))

    # also exercise the single-step (module-API) wrapper
    lg1, h1o, o1 = jax.block_until_ready(
        latent_gru_forward(idx_seq[0], dist_seq[0], hidden0, params))
    rlg1, rh1, ro1 = _reference_step(idx_seq[0], dist_seq[0], hidden0, params)
    ok = (ok and jnp.allclose(lg1, rlg1, atol=1e-5)
          and jnp.allclose(h1o, rh1, atol=1e-5)
          and jnp.allclose(o1, ro1, atol=1e-5))

    if bool(ok):
        print("KERNEL_OK")
    else:
        raise SystemExit("mismatch vs reference")
</pallas_src>

<mosaic_0001>
module attributes {stable_mosaic.version = 11 : i64} {
  func.func @latent_gru_kernel(%arg0: i32, %arg1: memref<1x8x1xi32, #tpu.memory_space<vmem>>, %arg2: memref<1x8x1xf32, #tpu.memory_space<vmem>>, %arg3: memref<2x8x32xf32, #tpu.memory_space<vmem>>, %arg4: memref<64x96xf32, #tpu.memory_space<vmem>>, %arg5: memref<1x96xf32, #tpu.memory_space<vmem>>, %arg6: memref<32x32xf32, #tpu.memory_space<vmem>>, %arg7: memref<1x32xf32, #tpu.memory_space<vmem>>, %arg8: memref<64x96xf32, #tpu.memory_space<vmem>>, %arg9: memref<1x96xf32, #tpu.memory_space<vmem>>, %arg10: memref<32x32xf32, #tpu.memory_space<vmem>>, %arg11: memref<1x32xf32, #tpu.memory_space<vmem>>, %arg12: memref<1x16xf32, #tpu.memory_space<vmem>>, %arg13: memref<1x16xf32, #tpu.memory_space<vmem>>, %arg14: memref<48x32xf32, #tpu.memory_space<vmem>>, %arg15: memref<1x32xf32, #tpu.memory_space<vmem>>, %arg16: memref<1x8x32xf32, #tpu.memory_space<vmem>>, %arg17: memref<2x8x32xf32, #tpu.memory_space<vmem>>, %arg18: memref<1x8x48xf32, #tpu.memory_space<vmem>>, %arg19: memref<2x8x32xf32, #tpu.memory_space<vmem>>) attributes {dimension_semantics = [#tpu.dimension_semantics<arbitrary>], iteration_bounds = array<i64: 8>, scalar_prefetch = 0 : i64, scratch_operands = 1 : i64, tpu.core_type = #tpu.core_type<tc>, window_params = [{transform_indices = @transform_0, window_bounds = array<i64: 1, 8, 1>}, {transform_indices = @transform_1, window_bounds = array<i64: 1, 8, 1>}, {pipeline_mode = #tpu.pipeline_mode<synchronous>, transform_indices = @transform_2, window_bounds = array<i64: 2, 8, 32>}, {pipeline_mode = #tpu.pipeline_mode<synchronous>, transform_indices = @transform_3, window_bounds = array<i64: 64, 96>}, {pipeline_mode = #tpu.pipeline_mode<synchronous>, transform_indices = @transform_4, window_bounds = array<i64: 1, 96>}, {pipeline_mode = #tpu.pipeline_mode<synchronous>, transform_indices = @transform_5, window_bounds = array<i64: 32, 32>}, {pipeline_mode = #tpu.pipeline_mode<synchronous>, transform_indices = @transform_6, window_bounds = array<i64: 1, 32>}, {pipeline_mode = #tpu.pipeline_mode<synchronous>, transform_indices = @transform_7, window_bounds = array<i64: 64, 96>}, {pipeline_mode = #tpu.pipeline_mode<synchronous>, transform_indices = @transform_8, window_bounds = array<i64: 1, 96>}, {pipeline_mode = #tpu.pipeline_mode<synchronous>, transform_indices = @transform_9, window_bounds = array<i64: 32, 32>}, {pipeline_mode = #tpu.pipeline_mode<synchronous>, transform_indices = @transform_10, window_bounds = array<i64: 1, 32>}, {pipeline_mode = #tpu.pipeline_mode<synchronous>, transform_indices = @transform_11, window_bounds = array<i64: 1, 16>}, {pipeline_mode = #tpu.pipeline_mode<synchronous>, transform_indices = @transform_12, window_bounds = array<i64: 1, 16>}, {pipeline_mode = #tpu.pipeline_mode<synchronous>, transform_indices = @transform_13, window_bounds = array<i64: 48, 32>}, {pipeline_mode = #tpu.pipeline_mode<synchronous>, transform_indices = @transform_14, window_bounds = array<i64: 1, 32>}, {transform_indices = @transform_15, window_bounds = array<i64: 1, 8, 32>}, {pipeline_mode = #tpu.pipeline_mode<synchronous>, transform_indices = @transform_16, window_bounds = array<i64: 2, 8, 32>}, {transform_indices = @transform_17, window_bounds = array<i64: 1, 8, 48>}]} {
    %c0_i32 = arith.constant 0 : i32
    %0 = arith.cmpi eq, %arg0, %c0_i32 : i32
    %1 = arith.extui %0 : i1 to i32
    %c0_i32_0 = arith.constant 0 : i32
    %2 = arith.cmpi ne, %1, %c0_i32_0 : i32
    scf.if %2 {
      %c0_59 = arith.constant 0 : index
      %c0_60 = arith.constant 0 : index
      %c0_61 = arith.constant 0 : index
      %111 = vector.load %arg3[%c0_59, %c0_60, %c0_61] : memref<2x8x32xf32, #tpu.memory_space<vmem>>, vector<2x8x32xf32>
      %c0_62 = arith.constant 0 : index
      %c0_63 = arith.constant 0 : index
      %c0_64 = arith.constant 0 : index
      %112 = vector.load %arg19[%c0_62, %c0_63, %c0_64] : memref<2x8x32xf32, #tpu.memory_space<vmem>>, vector<2x8x32xf32>
      tpu.vector_store %arg19[%c0_62, %c0_63, %c0_64], %111 {strides = array<i32>} : memref<2x8x32xf32, #tpu.memory_space<vmem>>, vector<2x8x32xf32>,
    } else {
    }
    %c0 = arith.constant 0 : index
    %c0_1 = arith.constant 0 : index
    %c0_2 = arith.constant 0 : index
    %3 = vector.load %arg1[%c0, %c0_1, %c0_2] : memref<1x8x1xi32, #tpu.memory_space<vmem>>, vector<1x8x1xi32>
    %4 = vector.shape_cast %3 : vector<1x8x1xi32> to vector<8x1xi32>
    %5 = tpu.iota {dimensions = array<i32: 1>} : vector<8x32xi32>
    %6 = vector.broadcast %4 : vector<8x1xi32> to vector<8x32xi32>
    %7 = arith.cmpi eq, %6, %5 : vector<8x32xi32>
    %8 = arith.extui %7 : vector<8x32xi1> to vector<8x32xi32>
    %9 = arith.sitofp %8 : vector<8x32xi32> to vector<8x32xf32>
    %c0_3 = arith.constant 0 : index
    %c0_4 = arith.constant 0 : index
    %c0_5 = arith.constant 0 : index
    %10 = vector.load %arg19[%c0_3, %c0_4, %c0_5] : memref<2x8x32xf32, #tpu.memory_space<vmem>>, vector<1x8x32xf32>
    %11 = vector.shape_cast %10 : vector<1x8x32xf32> to vector<8x32xf32>
    %c1 = arith.constant 1 : index
    %c0_6 = arith.constant 0 : index
    %c0_7 = arith.constant 0 : index
    %12 = vector.load %arg19[%c1, %c0_6, %c0_7] : memref<2x8x32xf32, #tpu.memory_space<vmem>>, vector<1x8x32xf32>
    %13 = vector.shape_cast %12 : vector<1x8x32xf32> to vector<8x32xf32>
    %14 = tpu.concatenate %9, %11 in 1 : vector<8x32xf32>, vector<8x32xf32> -> vector<8x64xf32>
    %c0_8 = arith.constant 0 : index
    %c0_9 = arith.constant 0 : index
    %15 = vector.load %arg4[%c0_8, %c0_9] : memref<64x96xf32, #tpu.memory_space<vmem>>, vector<64x96xf32>
    %c0_10 = arith.constant 0 : index
    %c0_11 = arith.constant 0 : index
    %16 = vector.load %arg5[%c0_10, %c0_11] : memref<1x96xf32, #tpu.memory_space<vmem>>, vector<1x96xf32>
    %c0_12 = arith.constant 0 : index
    %c0_13 = arith.constant 0 : index
    %17 = vector.load %arg6[%c0_12, %c0_13] : memref<32x32xf32, #tpu.memory_space<vmem>>, vector<32x32xf32>
    %c0_14 = arith.constant 0 : index
    %c0_15 = arith.constant 0 : index
    %18 = vector.load %arg7[%c0_14, %c0_15] : memref<1x32xf32, #tpu.memory_space<vmem>>, vector<1x32xf32>
    %cst = arith.constant dense<0.000000e+00> : vector<8x96xf32>
    %19 = tpu.matmul %14, %15, %cst {dimension_numbers = #tpu.dot_dimension_numbers<[1], [0], [0], [1], [0, 0, 1, 1], [], []>} : vector<8x64xf32>, vector<64x96xf32>, vector<8x96xf32> -> vector<8x96xf32>
    %20 = vector.broadcast %16 : vector<1x96xf32> to vector<8x96xf32>
    %21 = arith.addf %19, %20 : vector<8x96xf32>
    %cst_16 = arith.constant dense<0.000000e+00> : vector<8x32xf32>
    %22 = tpu.matmul %11, %17, %cst_16 {dimension_numbers = #tpu.dot_dimension_numbers<[1], [0], [0], [1], [0, 0, 1, 1], [], []>} : vector<8x32xf32>, vector<32x32xf32>, vector<8x32xf32> -> vector<8x32xf32>
    %23 = vector.broadcast %18 : vector<1x32xf32> to vector<8x32xf32>
    %24 = arith.addf %22, %23 : vector<8x32xf32>
    %25 = vector.extract_strided_slice %21 {offsets = [0, 0], sizes = [8, 32], strides = [1, 1]} : vector<8x96xf32> to vector<8x32xf32>
    %26 = arith.negf %25 : vector<8x32xf32>
    %27 = math.exp %26 : vector<8x32xf32>
    %cst_17 = arith.constant 1.000000e+00 : f32
    %28 = vector.broadcast %cst_17 : f32 to vector<8x32xf32>
    %29 = arith.addf %28, %27 : vector<8x32xf32>
    %30 = arith.divf %28, %29 : vector<8x32xf32>
    %31 = vector.extract_strided_slice %21 {offsets = [0, 32], sizes = [8, 32], strides = [1, 1]} : vector<8x96xf32> to vector<8x32xf32>
    %32 = arith.negf %31 : vector<8x32xf32>
    %33 = math.exp %32 : vector<8x32xf32>
    %cst_18 = arith.constant 1.000000e+00 : f32
    %34 = vector.broadcast %cst_18 : f32 to vector<8x32xf32>
    %35 = arith.addf %34, %33 : vector<8x32xf32>
    %36 = arith.divf %34, %35 : vector<8x32xf32>
    %37 = vector.extract_strided_slice %21 {offsets = [0, 64], sizes = [8, 32], strides = [1, 1]} : vector<8x96xf32> to vector<8x32xf32>
    %38 = arith.mulf %30, %24 : vector<8x32xf32>
    %39 = arith.addf %37, %38 : vector<8x32xf32>
    %40 = math.tanh %39 : vector<8x32xf32>
    %cst_19 = arith.constant 1.000000e+00 : f32
    %41 = vector.broadcast %cst_19 : f32 to vector<8x32xf32>
    %42 = arith.subf %41, %36 : vector<8x32xf32>
    %43 = arith.mulf %42, %40 : vector<8x32xf32>
    %44 = arith.mulf %36, %11 : vector<8x32xf32>
    %45 = arith.addf %43, %44 : vector<8x32xf32>
    %46 = tpu.concatenate %45, %13 in 1 : vector<8x32xf32>, vector<8x32xf32> -> vector<8x64xf32>
    %c0_20 = arith.constant 0 : index
    %c0_21 = arith.constant 0 : index
    %47 = vector.load %arg8[%c0_20, %c0_21] : memref<64x96xf32, #tpu.memory_space<vmem>>, vector<64x96xf32>
    %c0_22 = arith.constant 0 : index
    %c0_23 = arith.constant 0 : index
    %48 = vector.load %arg9[%c0_22, %c0_23] : memref<1x96xf32, #tpu.memory_space<vmem>>, vector<1x96xf32>
    %c0_24 = arith.constant 0 : index
    %c0_25 = arith.constant 0 : index
    %49 = vector.load %arg10[%c0_24, %c0_25] : memref<32x32xf32, #tpu.memory_space<vmem>>, vector<32x32xf32>
    %c0_26 = arith.constant 0 : index
    %c0_27 = arith.constant 0 : index
    %50 = vector.load %arg11[%c0_26, %c0_27] : memref<1x32xf32, #tpu.memory_space<vmem>>, vector<1x32xf32>
    %cst_28 = arith.constant dense<0.000000e+00> : vector<8x96xf32>
    %51 = tpu.matmul %46, %47, %cst_28 {dimension_numbers = #tpu.dot_dimension_numbers<[1], [0], [0], [1], [0, 0, 1, 1], [], []>} : vector<8x64xf32>, vector<64x96xf32>, vector<8x96xf32> -> vector<8x96xf32>
    %52 = vector.broadcast %48 : vector<1x96xf32> to vector<8x96xf32>
    %53 = arith.addf %51, %52 : vector<8x96xf32>
    %cst_29 = arith.constant dense<0.000000e+00> : vector<8x32xf32>
    %54 = tpu.matmul %13, %49, %cst_29 {dimension_numbers = #tpu.dot_dimension_numbers<[1], [0], [0], [1], [0, 0, 1, 1], [], []>} : vector<8x32xf32>, vector<32x32xf32>, vector<8x32xf32> -> vector<8x32xf32>
    %55 = vector.broadcast %50 : vector<1x32xf32> to vector<8x32xf32>
    %56 = arith.addf %54, %55 : vector<8x32xf32>
    %57 = vector.extract_strided_slice %53 {offsets = [0, 0], sizes = [8, 32], strides = [1, 1]} : vector<8x96xf32> to vector<8x32xf32>
    %58 = arith.negf %57 : vector<8x32xf32>
    %59 = math.exp %58 : vector<8x32xf32>
    %cst_30 = arith.constant 1.000000e+00 : f32
    %60 = vector.broadcast %cst_30 : f32 to vector<8x32xf32>
    %61 = arith.addf %60, %59 : vector<8x32xf32>
    %62 = arith.divf %60, %61 : vector<8x32xf32>
    %63 = vector.extract_strided_slice %53 {offsets = [0, 32], sizes = [8, 32], strides = [1, 1]} : vector<8x96xf32> to vector<8x32xf32>
    %64 = arith.negf %63 : vector<8x32xf32>
    %65 = math.exp %64 : vector<8x32xf32>
    %cst_31 = arith.constant 1.000000e+00 : f32
    %66 = vector.broadcast %cst_31 : f32 to vector<8x32xf32>
    %67 = arith.addf %66, %65 : vector<8x32xf32>
    %68 = arith.divf %66, %67 : vector<8x32xf32>
    %69 = vector.extract_strided_slice %53 {offsets = [0, 64], sizes = [8, 32], strides = [1, 1]} : vector<8x96xf32> to vector<8x32xf32>
    %70 = arith.mulf %62, %56 : vector<8x32xf32>
    %71 = arith.addf %69, %70 : vector<8x32xf32>
    %72 = math.tanh %71 : vector<8x32xf32>
    %cst_32 = arith.constant 1.000000e+00 : f32
    %73 = vector.broadcast %cst_32 : f32 to vector<8x32xf32>
    %74 = arith.subf %73, %68 : vector<8x32xf32>
    %75 = arith.mulf %74, %72 : vector<8x32xf32>
    %76 = arith.mulf %68, %13 : vector<8x32xf32>
    %77 = arith.addf %75, %76 : vector<8x32xf32>
    %c0_33 = arith.constant 0 : index
    %c0_34 = arith.constant 0 : index
    %c0_35 = arith.constant 0 : index
    %78 = vector.load %arg19[%c0_33, %c0_34, %c0_35] : memref<2x8x32xf32, #tpu.memory_space<vmem>>, vector<1x8x32xf32>
    %79 = vector.shape_cast %78 : vector<1x8x32xf32> to vector<8x32xf32>
    %80 = vector.shape_cast %45 : vector<8x32xf32> to vector<1x8x32xf32>
    tpu.vector_store %arg19[%c0_33, %c0_34, %c0_35], %80 {strides = array<i32>} : memref<2x8x32xf32, #tpu.memory_space<vmem>>, vector<1x8x32xf32>,
    %c1_36 = arith.constant 1 : index
    %c0_37 = arith.constant 0 : index
    %c0_38 = arith.constant 0 : index
    %81 = vector.load %arg19[%c1_36, %c0_37, %c0_38] : memref<2x8x32xf32, #tpu.memory_space<vmem>>, vector<1x8x32xf32>
    %82 = vector.shape_cast %81 : vector<1x8x32xf32> to vector<8x32xf32>
    %83 = vector.shape_cast %77 : vector<8x32xf32> to vector<1x8x32xf32>
    tpu.vector_store %arg19[%c1_36, %c0_37, %c0_38], %83 {strides = array<i32>} : memref<2x8x32xf32, #tpu.memory_space<vmem>>, vector<1x8x32xf32>,
    %c7_i32 = arith.constant 7 : i32
    %84 = arith.cmpi eq, %arg0, %c7_i32 : i32
    %85 = arith.extui %84 : i1 to i32
    %c0_i32_39 = arith.constant 0 : i32
    %86 = arith.cmpi ne, %85, %c0_i32_39 : i32
    scf.if %86 {
      %c0_59 = arith.constant 0 : index
      %c0_60 = arith.constant 0 : index
      %c0_61 = arith.constant 0 : index
      %111 = vector.load %arg17[%c0_59, %c0_60, %c0_61] : memref<2x8x32xf32, #tpu.memory_space<vmem>>, vector<1x8x32xf32>
      %112 = vector.shape_cast %111 : vector<1x8x32xf32> to vector<8x32xf32>
      %113 = vector.shape_cast %45 : vector<8x32xf32> to vector<1x8x32xf32>
      tpu.vector_store %arg17[%c0_59, %c0_60, %c0_61], %113 {strides = array<i32>} : memref<2x8x32xf32, #tpu.memory_space<vmem>>, vector<1x8x32xf32>,
      %c1_62 = arith.constant 1 : index
      %c0_63 = arith.constant 0 : index
      %c0_64 = arith.constant 0 : index
      %114 = vector.load %arg17[%c1_62, %c0_63, %c0_64] : memref<2x8x32xf32, #tpu.memory_space<vmem>>, vector<1x8x32xf32>
      %115 = vector.shape_cast %114 : vector<1x8x32xf32> to vector<8x32xf32>
      %116 = vector.shape_cast %77 : vector<8x32xf32> to vector<1x8x32xf32>
      tpu.vector_store %arg17[%c1_62, %c0_63, %c0_64], %116 {strides = array<i32>} : memref<2x8x32xf32, #tpu.memory_space<vmem>>, vector<1x8x32xf32>,
    } else {
    }
    %c0_40 = arith.constant 0 : index
    %c0_41 = arith.constant 0 : index
    %c0_42 = arith.constant 0 : index
    %87 = vector.load %arg2[%c0_40, %c0_41, %c0_42] : memref<1x8x1xf32, #tpu.memory_space<vmem>>, vector<1x8x1xf32>
    %88 = vector.shape_cast %87 : vector<1x8x1xf32> to vector<8x1xf32>
    %c0_43 = arith.constant 0 : index
    %c0_44 = arith.constant 0 : index
    %89 = vector.load %arg12[%c0_43, %c0_44] : memref<1x16xf32, #tpu.memory_space<vmem>>, vector<1x16xf32>
    %90 = vector.broadcast %88 : vector<8x1xf32> to vector<8x16xf32>
    %91 = vector.broadcast %89 : vector<1x16xf32> to vector<8x16xf32>
    %92 = arith.mulf %90, %91 : vector<8x16xf32>
    %c0_45 = arith.constant 0 : index
    %c0_46 = arith.constant 0 : index
    %93 = vector.load %arg13[%c0_45, %c0_46] : memref<1x16xf32, #tpu.memory_space<vmem>>, vector<1x16xf32>
    %94 = vector.broadcast %93 : vector<1x16xf32> to vector<8x16xf32>
    %95 = arith.addf %92, %94 : vector<8x16xf32>
    %cst_47 = arith.constant 0.000000e+00 : f32
    %96 = vector.broadcast %cst_47 : f32 to vector<8x16xf32>
    %97 = arith.maximumf %95, %96 : vector<8x16xf32>
    %98 = tpu.concatenate %77, %97 in 1 : vector<8x32xf32>, vector<8x16xf32> -> vector<8x48xf32>
    %c0_48 = arith.constant 0 : index
    %c0_49 = arith.constant 0 : index
    %c0_50 = arith.constant 0 : index
    %99 = vector.load %arg18[%c0_48, %c0_49, %c0_50] : memref<1x8x48xf32, #tpu.memory_space<vmem>>, vector<1x8x48xf32>
    %100 = vector.shape_cast %99 : vector<1x8x48xf32> to vector<8x48xf32>
    %101 = vector.shape_cast %98 : vector<8x48xf32> to vector<1x8x48xf32>
    tpu.vector_store %arg18[%c0_48, %c0_49, %c0_50], %101 {strides = array<i32>} : memref<1x8x48xf32, #tpu.memory_space<vmem>>, vector<1x8x48xf32>,
    %c0_51 = arith.constant 0 : index
    %c0_52 = arith.constant 0 : index
    %102 = vector.load %arg14[%c0_51, %c0_52] : memref<48x32xf32, #tpu.memory_space<vmem>>, vector<48x32xf32>
    %cst_53 = arith.constant dense<0.000000e+00> : vector<8x32xf32>
    %103 = tpu.matmul %98, %102, %cst_53 {dimension_numbers = #tpu.dot_dimension_numbers<[1], [0], [0], [1], [0, 0, 1, 1], [], []>} : vector<8x48xf32>, vector<48x32xf32>, vector<8x32xf32> -> vector<8x32xf32>
    %c0_54 = arith.constant 0 : index
    %c0_55 = arith.constant 0 : index
    %104 = vector.load %arg15[%c0_54, %c0_55] : memref<1x32xf32, #tpu.memory_space<vmem>>, vector<1x32xf32>
    %105 = vector.broadcast %104 : vector<1x32xf32> to vector<8x32xf32>
    %106 = arith.addf %103, %105 : vector<8x32xf32>
    %107 = math.tanh %106 : vector<8x32xf32>
    %c0_56 = arith.constant 0 : index
    %c0_57 = arith.constant 0 : index
    %c0_58 = arith.constant 0 : index
    %108 = vector.load %arg16[%c0_56, %c0_57, %c0_58] : memref<1x8x32xf32, #tpu.memory_space<vmem>>, vector<1x8x32xf32>
    %109 = vector.shape_cast %108 : vector<1x8x32xf32> to vector<8x32xf32>
    %110 = vector.shape_cast %107 : vector<8x32xf32> to vector<1x8x32xf32>
    tpu.vector_store %arg16[%c0_56, %c0_57, %c0_58], %110 {strides = array<i32>} : memref<1x8x32xf32, #tpu.memory_space<vmem>>, vector<1x8x32xf32>,
    return
  }
  func.func @transform_0(%arg0: i32) -> (i32, i32, i32) {
    %c0_i32 = arith.constant 0 : i32
    %c0_i32_0 = arith.constant 0 : i32
    %c0_i32_1 = arith.constant 0 : i32
    return %arg0, %c0_i32, %c0_i32_0 : i32, i32, i32
  }
  func.func @transform_1(%arg0: i32) -> (i32, i32, i32) {
    %c0_i32 = arith.constant 0 : i32
    %c0_i32_0 = arith.constant 0 : i32
    %c0_i32_1 = arith.constant 0 : i32
    return %arg0, %c0_i32, %c0_i32_0 : i32, i32, i32
  }
  func.func @transform_2(%arg0: i32) -> (i32, i32, i32) {
    %c0_i32 = arith.constant 0 : i32
    %c0_i32_0 = arith.constant 0 : i32
    %c0_i32_1 = arith.constant 0 : i32
    %c0_i32_2 = arith.constant 0 : i32
    return %c0_i32, %c0_i32_0, %c0_i32_1 : i32, i32, i32
  }
  func.func @transform_3(%arg0: i32) -> (i32, i32) {
    %c0_i32 = arith.constant 0 : i32
    %c0_i32_0 = arith.constant 0 : i32
    %c0_i32_1 = arith.constant 0 : i32
    return %c0_i32, %c0_i32_0 : i32, i32
  }
  func.func @transform_4(%arg0: i32) -> (i32, i32) {
    %c0_i32 = arith.constant 0 : i32
    %c0_i32_0 = arith.constant 0 : i32
    %c0_i32_1 = arith.constant 0 : i32
    return %c0_i32, %c0_i32_0 : i32, i32
  }
  func.func @transform_5(%arg0: i32) -> (i32, i32) {
    %c0_i32 = arith.constant 0 : i32
    %c0_i32_0 = arith.constant 0 : i32
    %c0_i32_1 = arith.constant 0 : i32
    return %c0_i32, %c0_i32_0 : i32, i32
  }
  func.func @transform_6(%arg0: i32) -> (i32, i32) {
    %c0_i32 = arith.constant 0 : i32
    %c0_i32_0 = arith.constant 0 : i32
    %c0_i32_1 = arith.constant 0 : i32
    return %c0_i32, %c0_i32_0 : i32, i32
  }
  func.func @transform_7(%arg0: i32) -> (i32, i32) {
    %c0_i32 = arith.constant 0 : i32
    %c0_i32_0 = arith.constant 0 : i32
    %c0_i32_1 = arith.constant 0 : i32
    return %c0_i32, %c0_i32_0 : i32, i32
  }
  func.func @transform_8(%arg0: i32) -> (i32, i32) {
    %c0_i32 = arith.constant 0 : i32
    %c0_i32_0 = arith.constant 0 : i32
    %c0_i32_1 = arith.constant 0 : i32
    return %c0_i32, %c0_i32_0 : i32, i32
  }
  func.func @transform_9(%arg0: i32) -> (i32, i32) {
    %c0_i32 = arith.constant 0 : i32
    %c0_i32_0 = arith.constant 0 : i32
    %c0_i32_1 = arith.constant 0 : i32
    return %c0_i32, %c0_i32_0 : i32, i32
  }
  func.func @transform_10(%arg0: i32) -> (i32, i32) {
    %c0_i32 = arith.constant 0 : i32
    %c0_i32_0 = arith.constant 0 : i32
    %c0_i32_1 = arith.constant 0 : i32
    return %c0_i32, %c0_i32_0 : i32, i32
  }
  func.func @transform_11(%arg0: i32) -> (i32, i32) {
    %c0_i32 = arith.constant 0 : i32
    %c0_i32_0 = arith.constant 0 : i32
    %c0_i32_1 = arith.constant 0 : i32
    return %c0_i32, %c0_i32_0 : i32, i32
  }
  func.func @transform_12(%arg0: i32) -> (i32, i32) {
    %c0_i32 = arith.constant 0 : i32
    %c0_i32_0 = arith.constant 0 : i32
    %c0_i32_1 = arith.constant 0 : i32
    return %c0_i32, %c0_i32_0 : i32, i32
  }
  func.func @transform_13(%arg0: i32) -> (i32, i32) {
    %c0_i32 = arith.constant 0 : i32
    %c0_i32_0 = arith.constant 0 : i32
    %c0_i32_1 = arith.constant 0 : i32
    return %c0_i32, %c0_i32_0 : i32, i32
  }
  func.func @transform_14(%arg0: i32) -> (i32, i32) {
    %c0_i32 = arith.constant 0 : i32
    %c0_i32_0 = arith.constant 0 : i32
    %c0_i32_1 = arith.constant 0 : i32
    return %c0_i32, %c0_i32_0 : i32, i32
  }
  func.func @transform_15(%arg0: i32) -> (i32, i32, i32) {
    %c0_i32 = arith.constant 0 : i32
    %c0_i32_0 = arith.constant 0 : i32
    %c0_i32_1 = arith.constant 0 : i32
    return %arg0, %c0_i32, %c0_i32_0 : i32, i32, i32
  }
  func.func @transform_16(%arg0: i32) -> (i32, i32, i32) {
    %c0_i32 = arith.constant 0 : i32
    %c0_i32_0 = arith.constant 0 : i32
    %c0_i32_1 = arith.constant 0 : i32
    %c0_i32_2 = arith.constant 0 : i32
    return %c0_i32, %c0_i32_0, %c0_i32_1 : i32, i32, i32
  }
  func.func @transform_17(%arg0: i32) -> (i32, i32, i32) {
    %c0_i32 = arith.constant 0 : i32
    %c0_i32_0 = arith.constant 0 : i32
    %c0_i32_1 = arith.constant 0 : i32
    return %arg0, %c0_i32, %c0_i32_0 : i32, i32, i32
  }
}

</mosaic_0001>

<bundles_post_ra>
// kernel: tpu_custom_call.1
= control target key start
LH: loop header
LB: loop body
LE: loop exit
PB: predicated region body
PF: predicated region fallthrough
CT: control target
= control target key end

     0   :  { %s2055_s0 = inlined_call_operand.vmem [shape: s32[8,8,1], index: 0, kind: input, shape index: {}]   ;;  %s2056_s1 = inlined_call_operand.vmem [shape: f32[8,8,1], index: 1, kind: input, shape index: {}]   ;;  %s2057_s2 = inlined_call_operand.vmem [shape: f32[2,8,32], index: 2, kind: input, shape index: {}]   ;;  %s2058_s3 = inlined_call_operand.vmem [shape: f32[64,96], index: 3, kind: input, shape index: {}]   ;;  %s2059_s4 = inlined_call_operand.vmem [shape: f32[1,96], index: 4, kind: input, shape index: {}]   ;;  %s2060_s5 = inlined_call_operand.vmem [shape: f32[32,32], index: 5, kind: input, shape index: {}]   ;;  %s2061_s6 = inlined_call_operand.vmem [shape: f32[1,32], index: 6, kind: input, shape index: {}]   ;;  %s2062_s7 = inlined_call_operand.vmem [shape: f32[64,96], index: 7, kind: input, shape index: {}]   ;;  %s2063_s8 = inlined_call_operand.vmem [shape: f32[1,96], index: 8, kind: input, shape index: {}]   ;;  %s2064_s9 = inlined_call_operand.vmem [shape: f32[32,32], index: 9, kind: input, shape index: {}]   ;;  %s2065_s10 = inlined_call_operand.vmem [shape: f32[1,32], index: 10, kind: input, shape index: {}]   ;;  %s2066_s11 = inlined_call_operand.vmem [shape: f32[1,16], index: 11, kind: input, shape index: {}]   ;;  %s2067_s12 = inlined_call_operand.vmem [shape: f32[1,16], index: 12, kind: input, shape index: {}]   ;;  %s2068_s13 = inlined_call_operand.vmem [shape: f32[48,32], index: 13, kind: input, shape index: {}]   ;;  %s2069_s14 = inlined_call_operand.vmem [shape: f32[1,32], index: 14, kind: input, shape index: {}]   ;;  %s2070_s15 = inlined_call_operand.hbm [shape: f32[8,8,32], index: 15, kind: output, shape index: {0}]   ;;  %s2071_s16 = inlined_call_operand.hbm [shape: f32[2,8,32], index: 16, kind: output, shape index: {1}]   ;;  %s2072_s17 = inlined_call_operand.hbm [shape: f32[8,8,48], index: 17, kind: output, shape index: {2}]  }
   0x1   :  { %2085 = sst [smem:[#allocation17_spill]] %s2055_s0 }
   0x2   :  { %2086 = sst [smem:[#allocation18_spill]] %s2056_s1 }
   0x3   :  { %2087 = sst [smem:[#allocation19_spill]] %s2057_s2 }
   0x4   :  { %2088 = sst [smem:[#allocation20_spill]] %s2058_s3 }
   0x5   :  { %2089 = sst [smem:[#allocation21_spill]] %s2070_s15 }
   0x6   :  { %2090 = sst [smem:[#allocation22_spill]] %s2072_s17 }
   0x7   :  { %23 = vsyncpa [#allocation4], 0 }
   0x8   :  { %25 = vsyncpa [#allocation4 + $0x1], 0 }
   0x9   :  { %26 = vsyncpa [#allocation6], 0  ;;  %s1710_s24 = smov 0   ;;  %s1712_s25 = smov 0  }
   0xa   :  { %s1714_s26 = smov 0   ;;  %s1716_s27 = smov 0  }
   0xb LB: > { %2091 = sst [smem:[#allocation10_spill]] %s1599_s25  ;;  %s1729_s28 = sadd.s32 4294967295, %s1607_s27   ;;  %s1607_s27 = sphi %s1716_s27, %s2111_s27   ;;  %s1603_s26 = sphi %s1714_s26, %s2114_s26   ;;  %s1599_s25 = sphi %s1712_s25, %s2113_s25   ;;  %s1595_s24 = sphi %s1710_s24, %s2112_s24  }
   0xc   : > { %2092 = sst [smem:[#allocation11_spill]] %s1603_s26  ;;  %s2073_s29 = sadd.s32 4294967294, %s1607_s27  }
   0xd   : > { %2093 = sst [smem:[#allocation12_spill]] %s1607_s27  ;;  %s1733_s0 = sadd.s32 1, %s1607_s27  }
   0xe   : > { %2094 = sst [smem:[#allocation13_spill]] %s1733_s0  ;;  %s364_s30 = sadd.s32 1, %s1603_s26 }
   0xf   : > { %s361_s18 = ssub.s32 %s1607_s27, %s1733_s0  ;;  %p374_p0 = scmp.ne.s32.totalorder %s1603_s26, %s1599_s25 }
  0x10   : > { %p362_p1 = scmp.eq.s32.totalorder %s361_s18, 0  ;;  %p375_p2 = scmp.eq.s32.totalorder %s1729_s28, 7 }
  0x11   : > { %p380_p3 = scmp.ne.s32.totalorder %s1599_s25, %s1595_s24  ;;  %p381_p4 = scmp.eq.s32.totalorder %s2073_s29, 7 }
  0x12   : > { %s1745_s19 = scalar_select %p362_p1, %s1603_s26, %s364_s30  }
  0x13   : > { %p1749_p5 = por %p375_p2, %p374_p0  ;;  %p1753_p6 = por %p381_p4, %p380_p3 }
  0x14   : > { %2095 = sst [smem:[#allocation14_spill]] %s1745_s19  ;;  %p1278_p7 = scmp.ge.s32.totalorder %s1607_s27, 1 }
  0x15   : > { %s2096_s1 = scalar_select %p1749_p5, 1, 0 }
  0x16   : > { %s2098_s20 = scalar_select %p1753_p6, 1, 0 }
  0x17   : > { %2097 = sst [smem:[#allocation15_spill]] %s2096_s1  ;;  %p499_p8 = scmp.lt.s32.totalorder %s1607_s27, 9 }
  0x18   : > { %2099 = sst [smem:[#allocation16_spill]] %s2098_s20 }
  0x19   : > { %p500_p9 = pnand %p1278_p7, %p499_p8 }
  0x1a   : > { %s547_s21 = sand.u32 (!%p500_p9), 1, %s1599_s25   ;;  %p559_p10 = scmp.lt.s32.totalorder (!%p500_p9), %s1729_s28, 7 }
  0x1b   : > { %503 = sbr.rel (%p500_p9) target bundleno = 1855 (0x73f), region = 80  ;;  %s1761_s22 = sshll.u32 (!%p500_p9), %s547_s21, 3 }
  0x1c   : > { %s2100_s29 = sld [smem:[#allocation17_spill]] (!%p500_p9)  ;;  %s549_s17 = scalar_lea.vmem (!%p500_p9), [#allocation3], %s1761_s22 }
  0x1d   : > { %s2101_s20 = sld [smem:[#allocation18_spill]] (!%p500_p9)  ;;  %s558_s15 = scalar_lea.vmem (!%p500_p9), [#allocation7], %s1761_s22 }
  0x1e   : > { %p1283_p11 = scmp.ne.s32.totalorder (!%p500_p9), %s1729_s28, 0 }
  0x20   : > { %s560_s23 = scalar_select %p559_p10, %s1729_s28, 7 }
  0x21   : > { %570 = sbr.rel (%p1283_p11) target bundleno = 41 (0x29), region = 84  ;;  %s2102_s2 = sld [smem:[#allocation19_spill]] (!%p1283_p11) }
  0x22   : > { %s1281_s24 = sshll.u32 %s560_s23, 3 }
  0x23   : > { %s562_s19 = scalar_lea.vmem %s2100_s29, %s1281_s24  ;;  %s1770_s27 = scalar_lea.vmem %s2101_s20, %s1281_s24 }
  0x26   : > { %vm573_vm0 = vcmask 261120  }
  0x27   : > { %v571_v0 = vld [vmem:[%s2102_s2] sm:$0xff]  ;;  %v572_v1 = vld [vmem:[%s2102_s2 + $0x8] sm:$0xff] }
  0x28   : > { %574 = vst.msk [vmem:[#allocation2] sm:$0xff] %vm573_vm0, %v571_v0  ;;  %575 = vst.msk [vmem:[#allocation2 + $0x8] sm:$0xff] %vm573_vm0, %v572_v1 }
  0x29 PF: > { %v576_v2 = vld [vmem:[%s562_s19] sm:$0xff]  ;;  %s2103_s3 = sld [smem:[#allocation20_spill]]  ;;  %v1609_v4 = vmov 0   ;;  %v1610_v5 = vmov 0.0   ;;  %vm1611_vm1 = vmmov 0   ;;  %v606_v9 = vld [vmem:[%s2060_s5 + $0x18] sm:$0xff]  ;;  %v577_v18 = vlaneseq }
  0x2a   : > { %1477 = vset.pattern.permute.xlu0 %v1609_v4  ;;  %1343 = vmatprep.subr.mxu0 %v1610_v5  ;;  %v605_v11 = vld [vmem:[%s2060_s5 + $0x10] sm:$0xff]  ;;  %s1612_s26 = smov 32   ;;  %v604_v13 = vld [vmem:[%s2060_s5 + $0x8] sm:$0xff]  ;;  %v603_v15 = vld [vmem:[%s2060_s5] sm:$0xff]  ;;  %vm592_vm2 = vcmask 261120   ;;  %vm614_vm4 = vcmask 523264  }
  0x2b   : > { %580 = vperm.xlu0 %1477, %v576_v2   ;;  %1359 = vmatprep.mubr.msk.f32.mxu0 %vm1611_vm1, %v1610_v5  ;;  %v578_v19 = vand.u32 127, %v577_v18  ;;  %v1285_v26 = vld [vmem:[%s2059_s4] ss:$0 sm:$0xff]  ;;  %s1613_s20 = smov 64   ;;  %v803_v39 = vld [vmem:[%s2062_s7 + $0x38] sm:$0xff]  ;;  %v802_v40 = vld [vmem:[%s2062_s7 + $0x30] sm:$0xff] }
  0x2c   : > { %1362 = vmatprep.subr.mxu1 %v1610_v5  ;;  %1370 = vmatprep.mubr.msk.f32.mxu1 %vm1611_vm1, %v1610_v5  ;;  %v1287_v33 = vld [vmem:[%s2061_s6] ss:$0 sm:$0xff]  ;;  %v801_v41 = vld [vmem:[%s2062_s7 + $0x28] sm:$0xff]  ;;  %v799_v43 = vld [vmem:[%s2062_s7 + $0x18] sm:$0xff]  ;;  %s1614_s18 = smov 96   ;;  %p1295_p12 = scmp.ne.s32.totalorder %s1729_s28, 7 }
  0x2d   : > { %1363 = vmatpush3.msra.mxu1 %v606_v9  ;;  %v800_v42 = vld [vmem:[%s2062_s7 + $0x20] sm:$0xff]  ;;  %v798_v45 = vld [vmem:[%s2062_s7 + $0x10] sm:$0xff]  ;;  %v797_v47 = vld [vmem:[%s2062_s7 + $0x8] sm:$0xff] }
  0x2e   : > { %1364 = vmatprep.subr.mxu1 %v1610_v5  ;;  %v796_v48 = vld [vmem:[%s2062_s7] sm:$0xff]  ;;  %v808_v56 = vld [vmem:[%s2064_s9 + $0x18] sm:$0xff]  ;;  %v807_v58 = vld [vmem:[%s2064_s9 + $0x10] sm:$0xff] }
  0x2f   : > { %v601_v3 = vld [vmem:[%s2103_s3 + $0x38] sm:$0xff]  ;;  %v600_v6 = vld [vmem:[%s2103_s3 + $0x30] sm:$0xff]  ;;  %v585_v7 = vld [vmem:[#allocation2] sm:$0xff]  ;;  %1365 = vmatpush3.msra.mxu1 %v605_v11 }
  0x30   : > { %1344 = vmatpush3.msra.mxu0 %v601_v3  ;;  %v599_v8 = vld [vmem:[%s2103_s3 + $0x28] sm:$0xff]  ;;  %v598_v10 = vld [vmem:[%s2103_s3 + $0x20] sm:$0xff]  ;;  %589 = vrot.lane.b32.xlu0 %v585_v7, %s1612_s26  ;;  %v597_v12 = vld [vmem:[%s2103_s3 + $0x18] sm:$0xff] }
  0x31   : > { %1345 = vmatprep.subr.mxu0 %v1610_v5  ;;  %v596_v14 = vld [vmem:[%s2103_s3 + $0x10] sm:$0xff]  ;;  %1366 = vmatprep.subr.mxu1 %v1610_v5  ;;  %v595_v16 = vld [vmem:[%s2103_s3 + $0x8] sm:$0xff]  ;;  %v594_v17 = vld [vmem:[%s2103_s3] sm:$0xff] }
  0x32   : > { %1346 = vmatpush3.msra.mxu0 %v600_v6  ;;  %1367 = vmatpush3.msra.mxu1 %v604_v13  ;;  %v587_v46 = vld [vmem:[#allocation2 + $0x8] sm:$0xff]  ;;  %v805_v60 = vld [vmem:[%s2064_s9] sm:$0xff] }
  0x33   : > { %1347 = vmatprep.subr.mxu0 %v1610_v5  ;;  %1368 = vmatprep.subr.mxu1 %v1610_v5  ;;  %v806_v59 = vld [vmem:[%s2064_s9 + $0x8] sm:$0xff]  ;;  %v1290_v61 = vld [vmem:[%s2063_s8] ss:$0 sm:$0xff] }
  0x34   : > { %1348 = vmatpush3.msra.mxu0 %v599_v8  ;;  %1369 = vmatpush3.msra.mxu1 %v603_v15  ;;  %v1292_v8 = vld [vmem:[%s2065_s10] ss:$0 sm:$0xff] }
  0x35   : > { %1349 = vmatprep.subr.mxu0 %v1610_v5  ;;  %1371 = vmatmul.mubr.msk.f32.vlgmr.msra.gmra.mxu1 %vm592_vm2, %v585_v7 }
  0x36   : > { %1350 = vmatpush3.msra.mxu0 %v598_v10  ;;  %1373 = vmatprep.subr.mxu1 %v1610_v5 }
  0x37   : > { %1351 = vmatprep.subr.mxu0 %v1610_v5  ;;  %1389 = vmatprep.mubr.msk.f32.mxu1 %vm1611_vm1, %v1610_v5 }
  0x38   : > { %1352 = vmatpush3.msra.mxu0 %v597_v12  ;;  %1374 = vmatpush3.msra.mxu1 %v803_v39 }
  0x39   : > { %1353 = vmatprep.subr.mxu0 %v1610_v5  ;;  %1375 = vmatprep.subr.mxu1 %v1610_v5 }
  0x3a   : > { %1354 = vmatpush3.msra.mxu0 %v596_v14  ;;  %1376 = vmatpush3.msra.mxu1 %v802_v40 }
  0x3b   : > { %1355 = vmatprep.subr.mxu0 %v1610_v5  ;;  %1377 = vmatprep.subr.mxu1 %v1610_v5 }
  0x3c   : > { %1356 = vmatpush3.msra.mxu0 %v595_v16  ;;  %1378 = vmatpush3.msra.mxu1 %v801_v41 }
  0x3d   : > { %1357 = vmatprep.subr.mxu0 %v1610_v5  ;;  %1379 = vmatprep.subr.mxu1 %v1610_v5 }
  0x3e   : > { %1358 = vmatpush3.msra.mxu0 %v594_v17  ;;  %1380 = vmatpush3.msra.mxu1 %v800_v42 }
  0x3f   : > { %1381 = vmatprep.subr.mxu1 %v1610_v5 }
  0x40   : > { %1382 = vmatpush3.msra.mxu1 %v799_v43 }
  0x41   : > { %1383 = vmatprep.subr.mxu1 %v1610_v5 }
  0x42   : > { %1384 = vmatpush3.msra.mxu1 %v798_v45 }
  0x43   : > { %1385 = vmatprep.subr.mxu1 %v1610_v5 }
  0x44   : > { %1386 = vmatpush3.msra.mxu1 %v797_v47 }
  0x45   : > { %1387 = vmatprep.subr.mxu1 %v1610_v5 }
  0x46   : > { %1388 = vmatpush3.msra.mxu1 %v796_v48 }
  0x47   : > { %1392 = vmatprep.subr.mxu1 %v1610_v5 }
  0xa6   : > { %v581_v20 = vpop.permute.xlu0 %580 }
  0xa7   : > { %vm582_vm3 = vcmp.eq.s32.totalorder %v581_v20, %v578_v19 }
  0xa8   : > { %v1284_v21 = vsel %vm582_vm3, 1.0, %v1610_v5 }
  0xaa   : > { %v590_v22 = vpop.permute.xlu0 %589 }
  0xab   : > { %v593_v23 = vsel %vm592_vm2, %v1284_v21, %v590_v22 }
  0xac   : > { %1360 = vmatmul.mubr.msk.f32.vlgmr.msra.gmra.mxu0 %vm614_vm4, %v593_v23 }
  0xf5   : > { %v762_v24 = vpop.f32.mrf.mxu1 }
  0xf6   : > { %v763_v34 = vadd.f32 %v1287_v33, %v762_v24 }
  0xf7   : > { %v1372_v25 = vpop.f32.mrf.mxu1 }
 0x16c   : > { %v684_v27 = vpop.f32.mrf.mxu0 }
 0x16d   : > { %v685_v28 = vadd.f32 %v1285_v26, %v684_v27 }
 0x16e   : > { %v1361_v29 = vpop.f32.mrf.mxu0 }
 0x16f   : > { %v1289_v30 = vmul.f32 -1.442695, %v685_v28 }
 0x171   : > { %1478 = vpow2.f32 %v1289_v30 }
 0x17e   : > { %v1479_v31 = vpop.eup %1478 }
 0x17f   : > { %v769_v32 = vadd.f32 1.0, %v1479_v31 }
 0x181   : > { %1480 = vrcp.f32 %v769_v32 }
 0x18e   : > { %v1481_v35 = vpop.eup %1480 }
 0x18f   : > { %v772_v36 = vmul.f32 %v1481_v35, %v763_v34  ;;  %v779_v49 = vsub.f32 1.0, %v1481_v35  ;;  %v785_v51 = vmul.f32 %v1481_v35, %v590_v22 }
 0x191   : > { %774 = vrot.lane.b32.xlu1 %v772_v36, %s1613_s20 }
 0x203   : > { %v775_v37 = vpop.permute.xlu1 %774 }
 0x204   : > { %v777_v38 = vadd.f32 %v775_v37, %v685_v28 }
 0x206   : > { %1482 = vtanh.f32 %v777_v38 }
 0x213   : > { %v1483_v44 = vpop.eup %1482 }
 0x214   : > { %781 = vrot.lane.b32.xlu1 %v1483_v44, %s1614_s18 }
 0x218   : > { %792 = vrot.lane.b32.xlu1 %v587_v46, %s1612_s26 }
 0x286   : > { %v782_v50 = vpop.permute.xlu1 %781 }
 0x287   : > { %v784_v52 = vmul.f32 %v782_v50, %v779_v49 }
 0x289   : > { %v786_v53 = vadd.f32 %v785_v51, %v784_v52 }
 0x28a   : > { %v793_v54 = vpop.permute.xlu1 %792 }
 0x28b   : > { %788 = vrot.lane.b32.xlu0 %v786_v53, %s1614_s18 }
 0x2fd   : > { %v789_v55 = vpop.permute.xlu0 %788 }
 0x2fe   : > { %988 = vst.msk [vmem:[#allocation2] sm:$0xff] %vm592_vm2, %v789_v55  ;;  %v795_v57 = vsel %vm592_vm2, %v789_v55, %v793_v54 }
 0x2ff   : > { %1390 = vmatmul.mubr.msk.f32.vlgmr.msra.gmra.mxu1 %vm614_vm4, %v795_v57 }
 0x300   : > { %1393 = vmatpush3.msra.mxu1 %v808_v56  ;;  %1400 = vmatprep.mubr.msk.f32.mxu1 %vm1611_vm1, %v1610_v5 }
 0x301   : > { %1394 = vmatprep.subr.mxu1 %v1610_v5 }
 0x302   : > { %1395 = vmatpush3.msra.mxu1 %v807_v58 }
 0x303   : > { %1396 = vmatprep.subr.mxu1 %v1610_v5 }
 0x304   : > { %1397 = vmatpush3.msra.mxu1 %v806_v59 }
 0x305   : > { %1398 = vmatprep.subr.mxu1 %v1610_v5 }
 0x306   : > { %1399 = vmatpush3.msra.mxu1 %v805_v60 }
 0x307   : > { %1401 = vmatmul.mubr.msk.f32.vlgmr.msra.gmra.mxu1 %vm592_vm2, %v587_v46 }
 0x3bf   : > { %v885_v62 = vpop.f32.mrf.mxu1 }
 0x3c0   : > { %v886_v63 = vadd.f32 %v1290_v61, %v885_v62 }
 0x3c1   : > { %v1391_v0 = vpop.f32.mrf.mxu1 }
 0x3c2   : > { %v1294_v1 = vmul.f32 -1.442695, %v886_v63 }
 0x3c4   : > { %1484 = vpow2.f32 %v1294_v1 }
 0x3c7   : > { %v963_v2 = vpop.f32.mrf.mxu1 }
 0x3c8   : > { %v964_v9 = vadd.f32 %v1292_v8, %v963_v2 }
 0x3c9   : > { %v1402_v3 = vpop.f32.mrf.mxu1 }
 0x3d1   : > { %v1485_v6 = vpop.eup %1484 }
 0x3d2   : > { %v970_v7 = vadd.f32 1.0, %v1485_v6 }
 0x3d4   : > { %1486 = vrcp.f32 %v970_v7 }
 0x3e1   : > { %v1487_v10 = vpop.eup %1486 }
 0x3e2   : > { %v973_v11 = vmul.f32 %v1487_v10, %v964_v9  ;;  %v980_v15 = vsub.f32 1.0, %v1487_v10  ;;  %v986_v17 = vmul.f32 %v1487_v10, %v793_v54 }
 0x3e4   : > { %975 = vrot.lane.b32.xlu0 %v973_v11, %s1613_s20 }
 0x456   : > { %v976_v12 = vpop.permute.xlu0 %975 }
 0x457   : > { %v978_v13 = vadd.f32 %v976_v12, %v886_v63 }
 0x459   : > { %1488 = vtanh.f32 %v978_v13 }
 0x466   : > { %v1489_v14 = vpop.eup %1488 }
 0x467   : > { %982 = vrot.lane.b32.xlu1 %v1489_v14, %s1614_s18 }
 0x4d9   : > { %v983_v16 = vpop.permute.xlu1 %982 }
 0x4da   : > { %v985_v18 = vmul.f32 %v983_v16, %v980_v15 }
 0x4dc   : > { %v987_v19 = vadd.f32 %v986_v17, %v985_v18 }
 0x4de   : > { %990 = vrot.lane.b32.xlu0 %v987_v19, %s1614_s18 }
 0x54d   : > { %997 = sbr.rel (%p1295_p12) target bundleno = 1363 (0x553), region = 88 }
 0x550   : > { %v991_v20 = vpop.permute.xlu0 %990 }
 0x551   : > { %993 = vst.msk [vmem:[#allocation2 + $0x8] sm:$0xff] %vm592_vm2, %v991_v20 }
 0x552   : > { %998 = vst.msk [vmem:[#allocation5] sm:$0xff] %vm592_vm2, %v789_v55  ;;  %1000 = vst.msk [vmem:[#allocation5 + $0x8] sm:$0xff] %vm592_vm2, %v991_v20 }
 0x553 PF: > { %1490 = vset.pattern.permute.xlu0 %v1609_v4  ;;  %v1001_v21 = vld [vmem:[%s1770_s27] sm:$0xff]  ;;  %1403 = vmatprep.subr.mxu0 %v1610_v5  ;;  %v1036_v22 = vld [vmem:[%s2068_s13 + $0x28] sm:$0xff]  ;;  %v1034_v4 = vld [vmem:[%s2068_s13 + $0x18] sm:$0xff]  ;;  %vm1029_vm5 = vcmask 392192   ;;  %s1615_s21 = smov [#allocation5]  }
 0x554   : > { %1005 = vperm.xlu0 %1490, %v1001_v21   ;;  %1415 = vmatprep.mubr.msk.f32.mxu0 %vm1611_vm1, %v1610_v5  ;;  %v1035_v23 = vld [vmem:[%s2068_s13 + $0x20] sm:$0xff]  ;;  %v1033_v24 = vld [vmem:[%s2068_s13 + $0x10] sm:$0xff]  ;;  %v1032_v25 = vld [vmem:[%s2068_s13 + $0x8] sm:$0xff]  ;;  %s1148_s23 = sshll.u32 %s1615_s21, 4  ;;  %s1149_s23 = int_to_ptr.vmem [resolvable:$true] %s1148_s23 }
 0x555   : > { %1404 = vmatpush3.msra.mxu0 %v1036_v22  ;;  %v1031_v26 = vld [vmem:[%s2068_s13] sm:$0xff]  ;;  %s1493_s27 = scalar_lea.vmem %s1149_s23, 256  ;;  %p1500_p3 = scmp.lt.s32.totalorder %s1149_s23, %s1149_s23 }
 0x556   : > { %1405 = vmatprep.subr.mxu0 %v1610_v5  ;;  %v1296_v27 = vld [vmem:[%s2066_s11] ss:$0 sm:$0xff]  ;;  %p1494_p13 = scmp.ne.s32.totalorder %s1149_s23, %s1493_s27  ;;  %p1501_p4 = scmp.lt.s32.totalorder %s1493_s27, %s1493_s27 }
 0x557   : > { %1406 = vmatpush3.msra.mxu0 %v1035_v23  ;;  %v1297_v29 = vld [vmem:[%s2067_s12] ss:$0 sm:$0xff] }
 0x558   : > { %1407 = vmatprep.subr.mxu0 %v1610_v5  ;;  %p1495_p0 = pnand %p1494_p13, %p375_p2  ;;  %p1502_p7 = por %p1501_p4, %p1500_p3 }
 0x559   : > { %1408 = vmatpush3.msra.mxu0 %v1034_v4 }
 0x55a   : > { %1409 = vmatprep.subr.mxu0 %v1610_v5  ;;  %p1496_p1 = pneg %p1495_p0 }
 0x55b   : > { %1410 = vmatpush3.msra.mxu0 %v1033_v24 }
 0x55c   : > { %1411 = vmatprep.subr.mxu0 %v1610_v5  ;;  %p1503_p8 = pnand %p1502_p7, %p1496_p1 }
 0x55d   : > { %1412 = vmatpush3.msra.mxu0 %v1032_v25 }
 0x55e   : > { %1413 = vmatprep.subr.mxu0 %v1610_v5 }
 0x55f   : > { %1414 = vmatpush3.msra.mxu0 %v1031_v26 }
 0x5cf   : > { %v1006_v28 = vpop.permute.xlu0 %1005 }
 0x5d0   : > { %v1014_v30 = vmul.f32 %v1296_v27, %v1006_v28 }
 0x5d2   : > { %v1022_v31 = vadd.f32 %v1297_v29, %v1014_v30 }
 0x5d4   : > { %v1023_v32 = vmax.f32 %v1022_v31, 0.0 }
 0x5d6   : > { %1025 = vrot.lane.b32.xlu0 %v1023_v32, %s1612_s26 }
 0x648   : > { %v1026_v5 = vpop.permute.xlu0 %1025 }
 0x649   : > { %v1028_v33 = vsel %vm592_vm2, %v991_v20, %v1026_v5 }
 0x64a   : > { %1030 = vst.msk [vmem:[%s558_s15] sm:$0xff] %vm1029_vm5, %v1028_v33  ;;  %1416 = vmatmul.mubr.msk.f32.vlgmr.msra.gmra.mxu0 %vm1029_vm5, %v1028_v33 }
 0x64b   : > { %1506 = shalt.err (!%p1503_p8)
}
 0x64c   : > { %s1616_s26 = smov 128   ;;  %s1617_s29 = smov 8   ;;  %v1298_v34 = vld [vmem:[%s2069_s14] ss:$0 sm:$0xff] }
 0x64d   : > { %1420 = dma.vmem_to_hbm [thread:$0]  (%p375_p2), %s1149_s23, 256, %s2071_s16, [#allocation6], %s1616_s26, %s1616_s26, %s1617_s29  }
 0x64e   : > { %s1119_s18 = sand.u32 1, %s1729_s28   ;;  %s1302_s24 = sshll.u32 %s1729_s28, 7 }
 0x64f   : > { %s1138_s30 = sshll.u32 %s549_s17, 4  ;;  %s1164_s21 = sshll.u32 %s558_s15, 4  ;;  %s1977_s30 = int_to_ptr.vmem [resolvable:$true] %s1138_s30  ;;  %s1984_s21 = int_to_ptr.vmem [resolvable:$true] %s1164_s21 }
 0x650   : > { %s2105_s25 = sld [smem:[#allocation21_spill]]  ;;  %s1989_s15 = scalar_lea.sflag [#allocation4], %s1119_s18 }
 0x651   : > { %s2107_s29 = sld [smem:[#allocation22_spill]]  ;;  %s1517_s2 = scalar_lea.vmem %s1977_s30, 128 }
 0x652   : > { %p1518_p9 = scmp.ne.s32.totalorder %s1977_s30, %s1517_s2  ;;  %s1618_s1 = smov [#allocation3]  }
 0x653   : > { %s1521_s27 = sshll.u32 %s1618_s1, 4  ;;  %s1522_s27 = int_to_ptr.vmem [resolvable:$false] %s1521_s27 }
 0x654   : > { %p1519_p10 = pnand %p1518_p9, %p1749_p5  ;;  %p1524_p12 = scmp.lt.s32.totalorder %s1977_s30, %s1522_s27 }
 0x656   : > { %s2106_s0 = smov %s2105_s25  ;;  %s1975_s3 = scalar_lea.hbm %s2105_s25, %s1302_s24 }
 0x657   : > { %s1982_s19 = scalar_lea.hbm %s2107_s29, %s1302_s24  ;;  %p1520_p11 = pneg %p1519_p10 }
 0x658   : > { %s1523_s25 = scalar_lea.vmem %s1522_s27, 256 }
 0x659   : > { %p1525_p13 = scmp.lt.s32.totalorder %s1523_s25, %s1517_s2 }
 0x65b   : > { %p1526_p0 = por %p1525_p13, %p1524_p12 }
 0x65d   : > { %p1527_p1 = pnand %p1526_p0, %p1520_p11 }
 0x70a   : > { %v1113_v35 = vpop.f32.mrf.mxu0 }
 0x70b   : > { %v1114_v36 = vadd.f32 %v1298_v34, %v1113_v35 }
 0x70c   : > { %v1417_v37 = vpop.f32.mrf.mxu0 }
 0x70d   : > { %1491 = vtanh.f32 %v1114_v36 }
 0x71a   : > { %v1492_v38 = vpop.eup %1491 }
 0x71b   : > { %1118 = vst.msk [vmem:[%s549_s17] sm:$0xff] %vm592_vm2, %v1492_v38 }
 0x71c   : > { %1530 = shalt.err (!%p1527_p1)
}
 0x71d   : > { %s1531_s17 = scalar_lea.hbm %s1975_s3, 128  ;;  %s1535_s24 = scalar_lea.hbm %s2106_s0, 1024 }
 0x71e   : > { %p1532_p3 = scmp.ne.s32.totalorder %s1975_s3, %s1531_s17  ;;  %p1536_p8 = scmp.lt.s32.totalorder %s1975_s3, %s2106_s0 }
 0x71f   : > { %p1537_p9 = scmp.lt.s32.totalorder %s1535_s24, %s1531_s17 }
 0x720   : > { %p1533_p4 = pnand %p1532_p3, %p1749_p5 }
 0x721   : > { %p1538_p10 = por %p1537_p9, %p1536_p8 }
 0x722   : > { %p1534_p7 = pneg %p1533_p4 }
 0x724   : > { %p1539_p11 = pnand %p1538_p10, %p1534_p7 }
 0x726   : > { %1542 = shalt.err (!%p1539_p11)
}
 0x727   : > { %1418 = dma.vmem_to_hbm [thread:$0]  (%p1749_p5), %s1977_s30, 128, %s1975_s3, %s1989_s15  }
 0x728   : > { %s1543_s2 = scalar_lea.vmem %s1984_s21, 128  ;;  %s1619_s1 = smov [#allocation7]  }
 0x729   : > { %p1544_p12 = scmp.ne.s32.totalorder %s1984_s21, %s1543_s2  ;;  %s1547_s27 = sshll.u32 %s1619_s1, 4  ;;  %s1548_s27 = int_to_ptr.vmem [resolvable:$false] %s1547_s27 }
 0x72a   : > { %s1549_s25 = scalar_lea.vmem %s1548_s27, 256  ;;  %p1550_p1 = scmp.lt.s32.totalorder %s1984_s21, %s1548_s27 }
 0x72b   : > { %p1545_p13 = pnand %p1544_p12, %p1749_p5  ;;  %p1551_p3 = scmp.lt.s32.totalorder %s1549_s25, %s1543_s2 }
 0x72d   : > { %p1546_p0 = pneg %p1545_p13  ;;  %p1552_p4 = por %p1551_p3, %p1550_p1 }
 0x72f   : > { %p1553_p7 = pnand %p1552_p4, %p1546_p0 }
 0x731   : > { %1556 = shalt.err (!%p1553_p7)
}
 0x732   : > { %s1557_s17 = scalar_lea.hbm %s1982_s19, 128  ;;  %s1561_s22 = scalar_lea.hbm %s2107_s29, 1024 }
 0x733   : > { %p1558_p8 = scmp.ne.s32.totalorder %s1982_s19, %s1557_s17  ;;  %p1562_p11 = scmp.lt.s32.totalorder %s1982_s19, %s2107_s29 }
 0x734   : > { %p1563_p12 = scmp.lt.s32.totalorder %s1561_s22, %s1557_s17 }
 0x735   : > { %p1559_p9 = pnand %p1558_p8, %p1749_p5 }
 0x736   : > { %p1564_p13 = por %p1563_p12, %p1562_p11 }
 0x737   : > { %p1560_p10 = pneg %p1559_p9 }
 0x739   : > { %p1565_p0 = pnand %p1564_p13, %p1560_p10 }
 0x73b   : > { %1568 = shalt.err (!%p1565_p0)
}
 0x73c   : > { %1421 = dma.vmem_to_hbm [thread:$0]  (%p1749_p5), %s1984_s21, 128, %s1982_s19, %s1989_s15  }
 0x73d   : > { %1586 = dma.done.wait (%p375_p2), [#allocation6], 256  }
 0x73e   : > { %1588 = vsyncadd (%p375_p2), [#allocation6], 4294967040 }
 0x73f PF: > { %s2108_s23 = sld [smem:[#allocation12_spill]] }
 0x745   : > { %p1435_p1 = scmp.ge.s32.totalorder %s2108_s23, 2  ;;  %s2110_s2 = sadd.s32 4294967294, %s2108_s23  }
 0x746   : > { %s1180_s1 = sand.u32 1, %s2110_s2  }
 0x747   : > { %p1427_p3 = pnand %p1435_p1, %p1753_p6  ;;  %s1181_s20 = scalar_lea.sflag [#allocation4], %s1180_s1 }
 0x749   : > { %p1428_p4 = pneg %p1427_p3 }
 0x74b   : > { %1590 = dma.done.wait (%p1428_p4), %s1181_s20, 256  }
 0x74c   : > { %1592 = vsyncadd (%p1428_p4), %s1181_s20, 4294967040  ;;  %s2111_s27 = sld [smem:[#allocation13_spill]] }
 0x74d   : > { %s2112_s24 = sld [smem:[#allocation10_spill]] }
 0x74e   : > { %s2113_s25 = sld [smem:[#allocation11_spill]] }
 0x74f   : > { %s2114_s26 = sld [smem:[#allocation14_spill]] }
 0x752   : > { %p29_p5 = scmp.ge.s32.totalorder %s2111_s27, 10  }
 0x754   :  { %31 = sbr.rel (!%p29_p5) target bundleno = 11 (0xb), region = 151 }
 0x759   :  { %1195 = vsyncpa [#allocation4], 1 }
 0x75a   :  { %1197 = vsyncpa [#allocation4 + $0x1], 1 }
 0x75b   :  { %1198 = vsyncpa [#allocation6], 1 }

</bundles_post_ra>
